<compile_context>
chip_gen: v7x
topology: tpu7x:2x2x1
jax: 0.10.0
libtpu: 0.0.40
codegen_flags: <defaults>
</compile_context>

<pallas_src>
import jax
import jax.numpy as jnp
from jax.experimental import pallas as pl
from jax.experimental.pallas import tpu as pltpu


def _unpack_conv1x1_kernel(x_ref, w_ref, b_ref, o_ref):
    # x_ref : (C_in, T)     uint8   -- raw pixels, T = lane tile of the flattened N*H*W axis
    # w_ref : (C_out, C_in) float32 -- 1x1 conv weight (same block every grid step -> resident)
    # b_ref : (C_out, 1)    float32 -- bias, broadcast over lanes
    # o_ref : (C_out, T)    float32 -- lane-dense output tile
    x = x_ref[...].astype(jnp.float32)                                  # Unpacker's `.float()` cast
    y = jnp.dot(w_ref[...], x, preferred_element_type=jnp.float32)      # one wide channel-mix matmul
    o_ref[...] = y + b_ref[...]                                         # cheap VPU bias broadcast


def _choose_lane_tile(nhw):
    """Largest lane tile (multiple of 128, <=2048) dividing nhw, preferring >=2 grid steps (v7x 2 TCs)."""
    candidates = [t for t in (2048, 1024, 512, 256, 128) if nhw % t == 0]
    if not candidates:
        return nhw  # full-extent block is always legal
    for t in candidates:               # descending
        if nhw // t >= 2:
            return t
    return candidates[-1]


def conv1x1_pallas(x_nchw_u8, weight, bias):
    """x_nchw_u8: (N, C_in, H, W) uint8; weight: (C_out, C_in) f32; bias: (C_out,) f32."""
    N, C_in, H, W = x_nchw_u8.shape
    C_out = weight.shape[0]
    nhw = N * H * W

    # Lane-dense layout: put the whole batch's spatial axis on the 128-wide lane dim.
    # (tiny uint8 transpose/reshape done once in the wrapper; ~kB of data)
    x_cin_nhw = jnp.transpose(x_nchw_u8, (1, 0, 2, 3)).reshape(C_in, nhw)
    w_f32 = weight.astype(jnp.float32)
    b_col = bias.reshape(C_out, 1).astype(jnp.float32)

    tile = _choose_lane_tile(nhw)
    grid = (nhw // tile,)

    out = pl.pallas_call(
        _unpack_conv1x1_kernel,
        out_shape=jax.ShapeDtypeStruct((C_out, nhw), jnp.float32),
        grid_spec=pltpu.PrefetchScalarGridSpec(
            num_scalar_prefetch=0,
            grid=grid,
            in_specs=[
                pl.BlockSpec((C_in, tile), lambda j: (0, j)),
                pl.BlockSpec((C_out, C_in), lambda j: (0, 0)),
                pl.BlockSpec((C_out, 1), lambda j: (0, 0)),
            ],
            out_specs=pl.BlockSpec((C_out, tile), lambda j: (0, j)),
        ),
        compiler_params=pltpu.CompilerParams(
            dimension_semantics=("parallel",),
            # NOTE: tiles here are tiny; when scaling to real image sizes re-derive the
            # lane tile against v7x's 64 MiB VMEM and set vmem_limit_bytes explicitly.
        ),
    )(x_cin_nhw, w_f32, b_col)

    # back to NCHW
    return out.reshape(C_out, N, H, W).transpose(1, 0, 2, 3)


class Unpacker:
    """JAX/Pallas equivalent of the PyTorch `Unpacker` wrapper (dict in, dict out)."""

    def __init__(self, module_fn, input_key="image", output_key="output"):
        self.input_key = input_key
        self.output_key = output_key
        self.module_fn = module_fn

    def __call__(self, sample, *args, **kwargs):
        x = sample[self.input_key]
        # cast-to-float + inner module forward are fused inside the Pallas kernel
        y = self.module_fn(x)
        sample[self.output_key] = y
        return sample


if __name__ == "__main__":
    key = jax.random.PRNGKey(0)
    k_img, k_w, k_b = jax.random.split(key, 3)

    N, C_in, H, W = 2, 4, 16, 16
    C_out = 8

    # deterministic "image" data (uint8 pixels, like a typical crumpets sample)
    image = jax.random.randint(k_img, (N, C_in, H, W), 0, 256, dtype=jnp.int32).astype(jnp.uint8)

    # deterministic inner-module parameters: nn.Conv2d(4, 8, kernel_size=1) -> weight (8,4), bias (8,)
    weight = jax.random.normal(k_w, (C_out, C_in), dtype=jnp.float32) * 0.1
    bias = jax.random.normal(k_b, (C_out,), dtype=jnp.float32) * 0.01

    unpacker = Unpacker(lambda x: conv1x1_pallas(x, weight, bias))

    sample = {"image": image}
    result = unpacker(sample)
    out = jax.block_until_ready(result["output"])

    # reference check (pure JAX)
    xf = image.astype(jnp.float32).reshape(N, C_in, H * W)
    ref = (jnp.einsum("oc,ncs->nos", weight, xf) + bias[None, :, None]).reshape(N, C_out, H, W)
    assert out.shape == (N, C_out, H, W)
    assert out.dtype == jnp.float32
    assert jnp.allclose(out, ref, atol=1e-4, rtol=1e-4)

    print("KERNEL_OK")
</pallas_src>

<mosaic_0001>
module attributes {stable_mosaic.version = 11 : i64} {
  func.func @_unpack_conv1x1_kernel(%arg0: i32, %arg1: memref<4x256xi8, #tpu.memory_space<vmem>>, %arg2: memref<8x4xf32, #tpu.memory_space<vmem>>, %arg3: memref<8x1xf32, #tpu.memory_space<vmem>>, %arg4: memref<8x256xf32, #tpu.memory_space<vmem>>) attributes {dimension_semantics = [#tpu.dimension_semantics<parallel>], iteration_bounds = array<i64: 2>, scalar_prefetch = 0 : i64, scratch_operands = 0 : i64, tpu.core_type = #tpu.core_type<tc>, window_params = [{transform_indices = @transform_0, window_bounds = array<i64: 4, 256>}, {pipeline_mode = #tpu.pipeline_mode<synchronous>, transform_indices = @transform_1, window_bounds = array<i64: 8, 4>}, {pipeline_mode = #tpu.pipeline_mode<synchronous>, transform_indices = @transform_2, window_bounds = array<i64: 8, 1>}, {transform_indices = @transform_3, window_bounds = array<i64: 8, 256>}]} {
    %c0 = arith.constant 0 : index
    %c0_0 = arith.constant 0 : index
    %0 = vector.load %arg1[%c0, %c0_0] : memref<4x256xi8, #tpu.memory_space<vmem>>, vector<4x256xi8>
    %1 = arith.uitofp %0 : vector<4x256xi8> to vector<4x256xf32>
    %c0_1 = arith.constant 0 : index
    %c0_2 = arith.constant 0 : index
    %2 = vector.load %arg2[%c0_1, %c0_2] : memref<8x4xf32, #tpu.memory_space<vmem>>, vector<8x4xf32>
    %cst = arith.constant dense<0.000000e+00> : vector<8x256xf32>
    %3 = tpu.matmul %2, %1, %cst {dimension_numbers = #tpu.dot_dimension_numbers<[1], [0], [0], [1], [0, 0, 1, 1], [], []>} : vector<8x4xf32>, vector<4x256xf32>, vector<8x256xf32> -> vector<8x256xf32>
    %c0_3 = arith.constant 0 : index
    %c0_4 = arith.constant 0 : index
    %4 = vector.load %arg3[%c0_3, %c0_4] : memref<8x1xf32, #tpu.memory_space<vmem>>, vector<8x1xf32>
    %5 = vector.broadcast %4 : vector<8x1xf32> to vector<8x256xf32>
    %6 = arith.addf %3, %5 : vector<8x256xf32>
    %c0_5 = arith.constant 0 : index
    %c0_6 = arith.constant 0 : index
    %7 = vector.load %arg4[%c0_5, %c0_6] : memref<8x256xf32, #tpu.memory_space<vmem>>, vector<8x256xf32>
    tpu.vector_store %arg4[%c0_5, %c0_6], %6 {strides = array<i32>} : memref<8x256xf32, #tpu.memory_space<vmem>>, vector<8x256xf32>,
    return
  }
  func.func @transform_0(%arg0: i32) -> (i32, i32) {
    %c0_i32 = arith.constant 0 : i32
    %c0_i32_0 = arith.constant 0 : i32
    return %c0_i32, %arg0 : i32, i32
  }
  func.func @transform_1(%arg0: i32) -> (i32, i32) {
    %c0_i32 = arith.constant 0 : i32
    %c0_i32_0 = arith.constant 0 : i32
    %c0_i32_1 = arith.constant 0 : i32
    return %c0_i32, %c0_i32_0 : i32, i32
  }
  func.func @transform_2(%arg0: i32) -> (i32, i32) {
    %c0_i32 = arith.constant 0 : i32
    %c0_i32_0 = arith.constant 0 : i32
    %c0_i32_1 = arith.constant 0 : i32
    return %c0_i32, %c0_i32_0 : i32, i32
  }
  func.func @transform_3(%arg0: i32) -> (i32, i32) {
    %c0_i32 = arith.constant 0 : i32
    %c0_i32_0 = arith.constant 0 : i32
    return %c0_i32, %arg0 : i32, i32
  }
}

</mosaic_0001>

<bundles_post_ra>
// kernel: tpu_custom_call.1
= control target key start
LH: loop header
LB: loop body
LE: loop exit
PB: predicated region body
PF: predicated region fallthrough
CT: control target
= control target key end

     0   :  { %8 = vsyncpa [#allocation3], 0  ;;  %s584_s0 = inlined_call_operand.vmem [shape: u8[4,512], index: 0, kind: input, shape index: {}]   ;;  %s585_s1 = inlined_call_operand.vmem [shape: f32[8,4], index: 1, kind: input, shape index: {}]   ;;  %s586_s2 = inlined_call_operand.vmem [shape: f32[8,1], index: 2, kind: input, shape index: {}]   ;;  %s587_s3 = inlined_call_operand.hbm [shape: f32[8,512], index: 3, kind: output, shape index: {}]  }
   0x1   :  { %10 = vsyncpa [#allocation3 + $0x1], 0  ;;  %s479_s12 = smov 0   ;;  %s481_s13 = smov 0  }
   0x2   :  { %s483_s14 = smov 0   ;;  %s485_s15 = smov 0  }
   0x3 LB: > { %s500_s16 = sadd.s32 4294967295, %s454_s15   ;;  %s335_s17 = sadd.s32 4294967294, %s454_s15   ;;  %s454_s15 = sphi %s485_s15, %s593_s15   ;;  %s450_s14 = sphi %s483_s14, %s592_s14   ;;  %s446_s13 = sphi %s481_s13, %s591_s13   ;;  %s442_s12 = sphi %s479_s12, %s590_s12  }
   0x4   : > { %s504_s18 = sadd.s32 1, %s454_s15   ;;  %s91_s19 = sadd.s32 1, %s450_s14 }
   0x5   : > { %s88_s20 = ssub.s32 %s454_s15, %s504_s18  ;;  %p101_p0 = scmp.ne.s32.totalorder %s450_s14, %s446_s13 }
   0x6   : > { %p89_p1 = scmp.eq.s32.totalorder %s88_s20, 0  ;;  %p102_p2 = scmp.eq.s32.totalorder %s500_s16, 1 }
   0x7   : > { %p107_p3 = scmp.ne.s32.totalorder %s446_s13, %s442_s12  ;;  %p108_p4 = scmp.eq.s32.totalorder %s335_s17, 1 }
   0x8   : > { %s515_s21 = scalar_select %p89_p1, %s450_s14, %s91_s19  }
   0x9   : > { %p517_p5 = por %p102_p2, %p101_p0  ;;  %p521_p6 = por %p108_p4, %p107_p3 }
   0xa   : > { %p338_p7 = scmp.ge.s32.totalorder %s454_s15, 1  ;;  %p140_p8 = scmp.lt.s32.totalorder %s454_s15, 3 }
   0xc   : > { %p141_p9 = pnand %p338_p7, %p140_p8 }
   0xd   : > { %s340_s24 = sshll.u32 (!%p141_p9), %s500_s16, 1  ;;  %v456_v0 = vmov (!%p141_p9), 0.0   ;;  %v457_v1 = vmov (!%p141_p9), 0   ;;  %v174_v2 = vld [vmem:[%s586_s2] sm:$0xff] (!%p141_p9)  ;;  %vm186_vm0 = vcmask (!%p141_p9), 1043456   ;;  %vm182_vm1 = vcmask (!%p141_p9), 31744  }
   0xe   : > { %144 = sbr.rel (%p141_p9) target bundleno = 263 (0x107), region = 32  ;;  %p164_p10 = scmp.lt.s32.totalorder (!%p141_p9), %s340_s24, 3  ;;  %255 = vmatprep.mubr.f32.mxu0 (!%p141_p9), %v456_v0  ;;  %391 = vset.pattern.permute.xlu0 (!%p141_p9), %v457_v1  ;;  %v173_v8 = vld [vmem:[%s585_s1] sm:$0xff] (!%p141_p9) }
   0xf   : > { %177 = vperm.xlu0 (!%p141_p9), %391, %v174_v2   ;;  %s160_s5 = sand.u32 (!%p141_p9), 1, %s446_s13   ;;  %s349_s7 = sshll.u32 (!%p141_p9), %s500_s16, 8 }
  0x10   : > { %s339_s6 = sshll.u32 (!%p141_p9), %s160_s5, 4  ;;  %s542_s17 = scalar_lea.hbm (!%p141_p9), %s587_s3, %s349_s7 }
  0x11   : > { %s162_s8 = scalar_lea.vmem (!%p141_p9), [#allocation2], %s339_s6  ;;  %s265_s19 = scalar_lea.sflag (!%p141_p9), [#allocation3], %s160_s5 }
  0x12   : > { %s279_s9 = sshll.u32 (!%p141_p9), %s162_s8, 4  ;;  %s458_s20 = smov (!%p141_p9), [#allocation2]   ;;  %s544_s9 = int_to_ptr.vmem [resolvable:$true] %s279_s9 }
  0x13   : > { %s392_s16 = scalar_lea.vmem (!%p141_p9), %s544_s9, 256 }
  0x14   : > { %p393_p11 = scmp.ne.s32.totalorder (!%p141_p9), %s544_s9, %s392_s16 }
  0x15   : > { %s595_s24 = smov (!%p164_p10, %s340_s24), 3 }
  0x16   : > { %s166_s29 = scalar_lea.vmem %s584_s0, %s595_s24  ;;  %p394_p12 = pnand %p393_p11, %p517_p5 }
  0x17   : > { %v169_v3 = vld [vmem:[%s166_s29] sm:$0x3]  ;;  %s396_s24 = sshll.u32 %s458_s20, 4  ;;  %s397_s24 = int_to_ptr.vmem [resolvable:$false] %s396_s24 }
  0x18   : > { %v170_v4 = vunpack.c.0.s8 %v169_v3  ;;  %p395_p13 = pneg %p394_p12  ;;  %s398_s25 = scalar_lea.vmem %s397_s24, 512 }
  0x19   : > { %p399_p0 = scmp.lt.s32.totalorder %s544_s9, %s397_s24  ;;  %p400_p1 = scmp.lt.s32.totalorder %s398_s25, %s392_s16 }
  0x1a   : > { %v171_v5 = vand.u32 255, %v170_v4 }
  0x1b   : > { %p401_p2 = por %p400_p1, %p399_p0 }
  0x1c   : > { %v172_v6 = vcvt.s32.f32 %v171_v5 }
  0x1d   : > { %p402_p3 = pnand %p401_p2, %p395_p13 }
  0x1e   : > { %v181_v7 = vcombine.high %v172_v6, %v172_v6 }
  0x20   : > { %341 = vmatprep.subr.msk.mxu0 %vm186_vm0, %v181_v7 }
  0x21   : > { %342 = vmatpush1.msk.msra.mxu0 %vm186_vm0, %v172_v6 }
  0x22   : > { %343 = vmatmul.mubr.msk.f32.vlgmr.msra.gmra.mrb[0].mxu0 %vm182_vm1, %v173_v8 }
  0x8e   : > { %v178_v9 = vpop.permute.xlu0 %177 }
  0xf5   : > { %v257_v10 = vpop.f32.mrb[0].mxu0 }
  0xf6   : > { %v258_v11 = vadd.f32 %v257_v10, %v178_v9  ;;  %v259_v12 = vpop.f32.mrb[1].mxu0 }
  0xf7   : > { %v260_v13 = vadd.f32 %v259_v12, %v178_v9 }
  0xf8   : > { %262 = vst [vmem:[%s162_s8] sm:$0xff] %v258_v11 }
  0xf9   : > { %263 = vst [vmem:[%s162_s8 + $0x8] sm:$0xff] %v260_v13 }
  0xfa   : > { %405 = shalt.err (!%p402_p3)
}
  0xfb   : > { %s406_s26 = scalar_lea.hbm %s542_s17, 256  ;;  %s410_s29 = scalar_lea.hbm %s587_s3, 512 }
  0xfc   : > { %p407_p4 = scmp.ne.s32.totalorder %s542_s17, %s406_s26  ;;  %p411_p9 = scmp.lt.u32.totalorder %s542_s17, %s587_s3 }
  0xfd   : > { %p412_p10 = scmp.lt.u32.totalorder %s410_s29, %s406_s26  ;;  %p414_p12 = scmp.lt.u32.totalorder %s406_s26, %s542_s17 }
  0xfe   : > { %p408_p7 = pnand %p407_p4, %p517_p5 }
  0xff   : > { %p413_p11 = por %p412_p10, %p411_p9 }
 0x100   : > { %p409_p8 = pneg %p408_p7 }
 0x101   : > { %p415_p13 = por %p414_p12, %p413_p11 }
 0x103   : > { %p416_p0 = pnand %p415_p13, %p409_p8 }
 0x105   : > { %419 = shalt.err (!%p416_p0)
}
 0x106   : > { %350 = dma.vmem_to_hbm [thread:$0]  (%p517_p5), %s544_s9, 256, %s542_s17, %s265_s19  }
 0x107 PF: > { %p356_p1 = scmp.ge.s32.totalorder %s454_s15, 2  ;;  %s291_s5 = sand.u32 1, %s442_s12  }
 0x108   : > { %s292_s6 = scalar_lea.sflag [#allocation3], %s291_s5 }
 0x109   : > { %p353_p2 = pnand %p356_p1, %p521_p6 }
 0x10b   : > { %437 = dma.done.wait (!%p353_p2), %s292_s6, 256  }
 0x10c   : > { %439 = vsyncadd (!%p353_p2), %s292_s6, 4294967040  ;;  %p13_p3 = scmp.ge.s32.totalorder %s504_s18, 4   ;;  %s590_s12 = smov %s446_s13 }
 0x10d   : > { %s591_s13 = smov %s450_s14  ;;  %s592_s14 = smov %s515_s21 }
 0x10e   : > { %s593_s15 = smov %s504_s18  ;;  %15 = sbr.rel (!%p13_p3) target bundleno = 3 (0x3), region = 67 }
 0x115   :  { %297 = vsyncpa [#allocation3], 1 }
 0x116   :  { %299 = vsyncpa [#allocation3 + $0x1], 1 }

</bundles_post_ra>
